<compile_context>
chip_gen: v7x
topology: tpu7x:2x2x1
jax: 0.10.0
libtpu: 0.0.40
codegen_flags: <defaults>
</compile_context>

<pallas_src>
import functools
import math

import jax
import jax.numpy as jnp
from jax.experimental import pallas as pl
from jax.experimental.pallas import tpu as pltpu


def _round_up(a, b):
    return (a + b - 1) // b * b


def _mlp_kernel(x_ref, w1_ref, b1_ref, w2_ref, b2_ref, *out_refs, tile_m, m_valid,
                need_row_mask, with_l1, compute_dtype, gelu_tanh):
    y_ref = out_refs[0]
    l1_ref = out_refs[1] if with_l1 else None
    i = pl.program_id(0)

    # In-kernel f32 -> bf16 cast (saves a full wrapper-side HBM pass over x).
    xv = x_ref[...].astype(compute_dtype)

    # c_fc: (tile_m, C) @ (C, H) on the MXU (bf16 inputs), f32 accumulation.
    h = jnp.dot(xv, w1_ref[...], preferred_element_type=jnp.float32)
    h = h + b1_ref[...]

    if gelu_tanh:
        # tanh-approx GELU: tanh goes to the EUP slot (cheaper on VALU-bound v6e/v7x).
        h = 0.5 * h * (1.0 + jnp.tanh(0.7978845608028654 * (h + 0.044715 * h * h * h)))
    else:
        # Exact (erf-based) GELU — matches F.gelu default.
        h = 0.5 * h * (1.0 + jax.lax.erf(h * 0.7071067811865476))

    # Straight-through mask `h*m + (1-m)*h` is a forward no-op -> dropped from the kernel.

    if with_l1:
        nchunks = tile_m // 8  # tile_m is always a multiple of 8 (enforced in wrapper)

        def fold(mask_rows):
            # L1 partial: fold |h| down to a lane-dense (8, H) tile using whole-vreg
            # static slices + VPU adds; abs (and the tail-row mask, last tile only)
            # are fused per 8-row chunk — no (tile_m, H) temp is materialized.
            part = None
            for k in range(nchunks):
                blk = jnp.abs(h[8 * k:8 * (k + 1), :])
                if mask_rows:
                    row = (jax.lax.broadcasted_iota(jnp.int32, (8, 1), 0)
                           + (i * tile_m + 8 * k))
                    blk = jnp.where(row < m_valid, blk, 0.0)
                part = blk if part is None else part + blk
            l1_ref[0] = part  # per-tile partial; scalar reduction finishes outside

        if need_row_mask:
            last = pl.num_programs(0) - 1

            @pl.when(i == last)
            def _():
                fold(True)      # only the last tile has (Pallas-padded) garbage rows

            @pl.when(i != last)
            def _():
                fold(False)     # unmasked fast path for all interior tiles
        else:
            fold(False)

    # c_proj: (tile_m, H) @ (H, C); feed MXU in bf16, accumulate in f32.
    y = jnp.dot(h.astype(compute_dtype), w2_ref[...],
                preferred_element_type=jnp.float32)
    y = y + b2_ref[...]
    y_ref[...] = y.astype(y_ref.dtype)


def _vmem_limit_bytes(tm, C, H, with_l1, in_itemsize, out_itemsize, w_itemsize):
    weights = (C * H + H * C) * w_itemsize        # W1 + W2, single-buffered (Buffered(1))
    biases = (H + C) * 4                          # b1 + b2, single-buffered
    x_tiles = 2 * tm * C * in_itemsize            # double-buffered input row tile
    y_tiles = 2 * tm * C * out_itemsize           # double-buffered output row tile
    l1_out = (2 * 8 * H * 4) if with_l1 else 0    # double-buffered lane-dense partials
    h_tmp = tm * H * (4 + w_itemsize)             # f32 h + bf16 cast fed to 2nd matmul
    est = weights + biases + x_tiles + y_tiles + l1_out + h_tmp + (8 << 20)  # margin
    return int(min(max(est, 16 << 20), 100 << 20))


def mlp_pallas(x, mask, w1, b1, w2, b2, *, tile_m=256, compute_dtype=jnp.bfloat16,
               gelu_approx_tanh=False):
    """x: [B, T, C]; mask: [B, T, 4C] or None (forward value does not depend on it);
       w1: [C, 4C]; b1: [4C]; w2: [4C, C]; b2: [C].  Returns (y [B,T,C], l1 scalar)."""
    B, T, C = x.shape
    H = w1.shape[1]
    M = B * T
    with_l1 = mask is not None

    # Row tile: multiple of 8 (f32 sublane granule; also keeps the fold loop valid),
    # clamped for tiny M.  Ragged M is handled by Pallas last-block padding.
    tm = max(8, min(_round_up(tile_m, 8), _round_up(M, 8)))
    num_tiles = pl.cdiv(M, tm)
    need_row_mask = (M % tm) != 0

    x2 = x.reshape(M, C)                       # no wrapper-side cast / pad
    w1c = w1.astype(compute_dtype)
    w2c = w2.astype(compute_dtype)
    b1r = b1.reshape(1, H).astype(jnp.float32)
    b2r = b2.reshape(1, C).astype(jnp.float32)

    kernel = functools.partial(
        _mlp_kernel, tile_m=tm, m_valid=M, need_row_mask=need_row_mask,
        with_l1=with_l1, compute_dtype=compute_dtype, gelu_tanh=gelu_approx_tanh)

    in_specs = [
        pl.BlockSpec((tm, C), lambda i: (i, 0)),                                   # x row tile
        pl.BlockSpec((C, H), lambda i: (0, 0), pipeline_mode=pl.Buffered(1)),      # W1 resident
        pl.BlockSpec((1, H), lambda i: (0, 0), pipeline_mode=pl.Buffered(1)),      # b1 resident
        pl.BlockSpec((H, C), lambda i: (0, 0), pipeline_mode=pl.Buffered(1)),      # W2 resident
        pl.BlockSpec((1, C), lambda i: (0, 0), pipeline_mode=pl.Buffered(1)),      # b2 resident
    ]

    out_shape = [jax.ShapeDtypeStruct((M, C), x.dtype)]
    out_specs = [pl.BlockSpec((tm, C), lambda i: (i, 0))]
    if with_l1:
        out_shape.append(jax.ShapeDtypeStruct((num_tiles, 8, H), jnp.float32))
        out_specs.append(pl.BlockSpec((1, 8, H), lambda i: (i, 0, 0)))

    vmem_limit = _vmem_limit_bytes(
        tm, C, H, with_l1,
        in_itemsize=x.dtype.itemsize,
        out_itemsize=x.dtype.itemsize,
        w_itemsize=jnp.dtype(compute_dtype).itemsize)

    outs = pl.pallas_call(
        kernel,
        out_shape=tuple(out_shape),
        grid_spec=pltpu.PrefetchScalarGridSpec(
            num_scalar_prefetch=0,
            grid=(num_tiles,),
            in_specs=in_specs,
            out_specs=tuple(out_specs),
        ),
        compiler_params=pltpu.CompilerParams(
            # No cross-iteration state -> row axis is safely parallel (v7x 2-TC sharding).
            dimension_semantics=("parallel",),
            vmem_limit_bytes=vmem_limit,
        ),
    )(x2, w1c, b1r, w2c, b2r)

    if with_l1:
        y2, l1_parts = outs
        l1 = jnp.sum(l1_parts)
    else:
        (y2,) = outs
        l1 = jnp.zeros((), jnp.float32)

    y = y2.reshape(B, T, C)
    return y, l1


def init_params(key, n_embd, bias=True, dtype=jnp.float32):
    """Deterministic PyTorch-Linear-style init: U(-1/sqrt(fan_in), 1/sqrt(fan_in))."""
    hidden = 4 * n_embd
    k1, k2, k3, k4 = jax.random.split(key, 4)
    bound1 = 1.0 / math.sqrt(n_embd)
    bound2 = 1.0 / math.sqrt(hidden)
    # stored already transposed to (in, out) for y = x @ W + b
    w1 = jax.random.uniform(k1, (n_embd, hidden), dtype, -bound1, bound1)
    b1 = jax.random.uniform(k2, (hidden,), dtype, -bound1, bound1) if bias else jnp.zeros((hidden,), dtype)
    w2 = jax.random.uniform(k3, (hidden, n_embd), dtype, -bound2, bound2)
    b2 = jax.random.uniform(k4, (n_embd,), dtype, -bound2, bound2) if bias else jnp.zeros((n_embd,), dtype)
    return w1, b1, w2, b2


if __name__ == "__main__":
    # Small config: batch=2, seq=12, n_embd=32 (hidden=128) -> M = 24 rows.
    B, T, C = 2, 12, 32
    H = 4 * C
    key = jax.random.PRNGKey(0)
    kx, km, kp = jax.random.split(key, 3)

    x = jax.random.normal(kx, (B, T, C), jnp.float32)
    # binary mask over the hidden (4*n_embd) activations (forward value does not depend on it)
    mask = (jax.random.uniform(km, (B, T, H)) > 0.5).astype(jnp.float32)

    w1, b1, w2, b2 = init_params(kp, C, bias=True)

    # Pure-JAX reference with the same bf16-matmul / f32-accumulate numerics as the kernel.
    def ref(x, mask):
        xb = x.reshape(-1, C).astype(jnp.bfloat16)
        h = jnp.dot(xb, w1.astype(jnp.bfloat16), preferred_element_type=jnp.float32) + b1
        h = 0.5 * h * (1.0 + jax.lax.erf(h / math.sqrt(2.0)))
        if mask is not None:
            m2 = mask.reshape(-1, H)
            h = h * m2 + (1.0 - m2) * h      # forward no-op, kept literal
            l1 = jnp.sum(jnp.abs(h))
        else:
            l1 = jnp.zeros((), jnp.float32)
        yv = jnp.dot(h.astype(jnp.bfloat16), w2.astype(jnp.bfloat16),
                     preferred_element_type=jnp.float32) + b2
        return yv.reshape(B, T, C).astype(x.dtype), l1

    # --- Case 1: mask present, single full tile (tm clamps to 24). L1 path, no padding.
    y, l1 = mlp_pallas(x, mask, w1, b1, w2, b2)
    jax.block_until_ready((y, l1))
    y_ref, l1_ref = ref(x, mask)
    assert jnp.allclose(y, y_ref, atol=2e-2, rtol=2e-2), "case1: output mismatch"
    assert jnp.allclose(l1, l1_ref, rtol=5e-3, atol=5e-1), "case1: l1 penalty mismatch"

    # --- Case 2: mask=None -> no-L1 kernel variant, plus ragged tiling (tile_m=16 -> 2 tiles,
    #     last tile relies on Pallas padded input read / partial output write).
    y2, l1_2 = mlp_pallas(x, None, w1, b1, w2, b2, tile_m=16)
    jax.block_until_ready((y2, l1_2))
    y_ref2, _ = ref(x, None)
    assert jnp.allclose(y2, y_ref2, atol=2e-2, rtol=2e-2), "case2: output mismatch"
    assert float(l1_2) == 0.0, "case2: l1 should be 0 when mask is None"

    # --- Case 3: mask present + ragged tiling -> exercises the pl.when-gated row mask on
    #     the last tile (padded-row garbage must not leak into L1 or the valid y rows).
    y3, l1_3 = mlp_pallas(x, mask, w1, b1, w2, b2, tile_m=16)
    jax.block_until_ready((y3, l1_3))
    assert jnp.allclose(y3, y_ref, atol=2e-2, rtol=2e-2), "case3: output mismatch"
    assert jnp.allclose(l1_3, l1_ref, rtol=5e-3, atol=5e-1), "case3: l1 penalty mismatch"

    print("KERNEL_OK")
</pallas_src>

<mosaic_0001>
module attributes {stable_mosaic.version = 11 : i64} {
  func.func @_mlp_kernel(%arg0: i32, %arg1: memref<24x32xf32, #tpu.memory_space<vmem>>, %arg2: memref<32x128xbf16, #tpu.memory_space<vmem>>, %arg3: memref<1x128xf32, #tpu.memory_space<vmem>>, %arg4: memref<128x32xbf16, #tpu.memory_space<vmem>>, %arg5: memref<1x32xf32, #tpu.memory_space<vmem>>, %arg6: memref<24x32xf32, #tpu.memory_space<vmem>>, %arg7: memref<1x8x128xf32, #tpu.memory_space<vmem>>) attributes {dimension_semantics = [#tpu.dimension_semantics<parallel>], iteration_bounds = array<i64: 1>, scalar_prefetch = 0 : i64, scratch_operands = 0 : i64, tpu.core_type = #tpu.core_type<tc>, window_params = [{transform_indices = @transform_0, window_bounds = array<i64: 24, 32>}, {pipeline_mode = #tpu.pipeline_mode<synchronous>, transform_indices = @transform_1, window_bounds = array<i64: 32, 128>}, {pipeline_mode = #tpu.pipeline_mode<synchronous>, transform_indices = @transform_2, window_bounds = array<i64: 1, 128>}, {pipeline_mode = #tpu.pipeline_mode<synchronous>, transform_indices = @transform_3, window_bounds = array<i64: 128, 32>}, {pipeline_mode = #tpu.pipeline_mode<synchronous>, transform_indices = @transform_4, window_bounds = array<i64: 1, 32>}, {transform_indices = @transform_5, window_bounds = array<i64: 24, 32>}, {transform_indices = @transform_6, window_bounds = array<i64: 1, 8, 128>}]} {
    %c0 = arith.constant 0 : index
    %c0_0 = arith.constant 0 : index
    %0 = vector.load %arg1[%c0, %c0_0] : memref<24x32xf32, #tpu.memory_space<vmem>>, vector<24x32xf32>
    %1 = arith.truncf %0 : vector<24x32xf32> to vector<24x32xbf16>
    %c0_1 = arith.constant 0 : index
    %c0_2 = arith.constant 0 : index
    %2 = vector.load %arg2[%c0_1, %c0_2] : memref<32x128xbf16, #tpu.memory_space<vmem>>, vector<32x128xbf16>
    %cst = arith.constant dense<0.000000e+00> : vector<24x128xf32>
    %3 = tpu.matmul %1, %2, %cst {dimension_numbers = #tpu.dot_dimension_numbers<[1], [0], [0], [1], [0, 0, 1, 1], [], []>} : vector<24x32xbf16>, vector<32x128xbf16>, vector<24x128xf32> -> vector<24x128xf32>
    %c0_3 = arith.constant 0 : index
    %c0_4 = arith.constant 0 : index
    %4 = vector.load %arg3[%c0_3, %c0_4] : memref<1x128xf32, #tpu.memory_space<vmem>>, vector<1x128xf32>
    %5 = vector.broadcast %4 : vector<1x128xf32> to vector<24x128xf32>
    %6 = arith.addf %3, %5 : vector<24x128xf32>
    %cst_5 = arith.constant 5.000000e-01 : f32
    %7 = vector.broadcast %cst_5 : f32 to vector<24x128xf32>
    %8 = arith.mulf %7, %6 : vector<24x128xf32>
    %cst_6 = arith.constant 0.707106769 : f32
    %9 = vector.broadcast %cst_6 : f32 to vector<24x128xf32>
    %10 = arith.mulf %6, %9 : vector<24x128xf32>
    %11 = math.erf %10 : vector<24x128xf32>
    %cst_7 = arith.constant 1.000000e+00 : f32
    %12 = vector.broadcast %cst_7 : f32 to vector<24x128xf32>
    %13 = arith.addf %12, %11 : vector<24x128xf32>
    %14 = arith.mulf %8, %13 : vector<24x128xf32>
    %15 = vector.extract_strided_slice %14 {offsets = [0, 0], sizes = [8, 128], strides = [1, 1]} : vector<24x128xf32> to vector<8x128xf32>
    %16 = math.absf %15 : vector<8x128xf32>
    %17 = vector.extract_strided_slice %14 {offsets = [8, 0], sizes = [8, 128], strides = [1, 1]} : vector<24x128xf32> to vector<8x128xf32>
    %18 = math.absf %17 : vector<8x128xf32>
    %19 = arith.addf %16, %18 : vector<8x128xf32>
    %20 = vector.extract_strided_slice %14 {offsets = [16, 0], sizes = [8, 128], strides = [1, 1]} : vector<24x128xf32> to vector<8x128xf32>
    %21 = math.absf %20 : vector<8x128xf32>
    %22 = arith.addf %19, %21 : vector<8x128xf32>
    %c0_8 = arith.constant 0 : index
    %c0_9 = arith.constant 0 : index
    %c0_10 = arith.constant 0 : index
    %23 = vector.load %arg7[%c0_8, %c0_9, %c0_10] : memref<1x8x128xf32, #tpu.memory_space<vmem>>, vector<1x8x128xf32>
    %24 = vector.shape_cast %23 : vector<1x8x128xf32> to vector<8x128xf32>
    %25 = vector.shape_cast %22 : vector<8x128xf32> to vector<1x8x128xf32>
    tpu.vector_store %arg7[%c0_8, %c0_9, %c0_10], %25 {strides = array<i32>} : memref<1x8x128xf32, #tpu.memory_space<vmem>>, vector<1x8x128xf32>,
    %26 = arith.truncf %14 : vector<24x128xf32> to vector<24x128xbf16>
    %c0_11 = arith.constant 0 : index
    %c0_12 = arith.constant 0 : index
    %27 = vector.load %arg4[%c0_11, %c0_12] : memref<128x32xbf16, #tpu.memory_space<vmem>>, vector<128x32xbf16>
    %cst_13 = arith.constant dense<0.000000e+00> : vector<24x32xf32>
    %28 = tpu.matmul %26, %27, %cst_13 {dimension_numbers = #tpu.dot_dimension_numbers<[1], [0], [0], [1], [0, 0, 1, 1], [], []>} : vector<24x128xbf16>, vector<128x32xbf16>, vector<24x32xf32> -> vector<24x32xf32>
    %c0_14 = arith.constant 0 : index
    %c0_15 = arith.constant 0 : index
    %29 = vector.load %arg5[%c0_14, %c0_15] : memref<1x32xf32, #tpu.memory_space<vmem>>, vector<1x32xf32>
    %30 = vector.broadcast %29 : vector<1x32xf32> to vector<24x32xf32>
    %31 = arith.addf %28, %30 : vector<24x32xf32>
    %c0_16 = arith.constant 0 : index
    %c0_17 = arith.constant 0 : index
    %32 = vector.load %arg6[%c0_16, %c0_17] : memref<24x32xf32, #tpu.memory_space<vmem>>, vector<24x32xf32>
    tpu.vector_store %arg6[%c0_16, %c0_17], %31 {strides = array<i32>} : memref<24x32xf32, #tpu.memory_space<vmem>>, vector<24x32xf32>,
    return
  }
  func.func @transform_0(%arg0: i32) -> (i32, i32) {
    %c0_i32 = arith.constant 0 : i32
    %c0_i32_0 = arith.constant 0 : i32
    return %arg0, %c0_i32 : i32, i32
  }
  func.func @transform_1(%arg0: i32) -> (i32, i32) {
    %c0_i32 = arith.constant 0 : i32
    %c0_i32_0 = arith.constant 0 : i32
    %c0_i32_1 = arith.constant 0 : i32
    return %c0_i32, %c0_i32_0 : i32, i32
  }
  func.func @transform_2(%arg0: i32) -> (i32, i32) {
    %c0_i32 = arith.constant 0 : i32
    %c0_i32_0 = arith.constant 0 : i32
    %c0_i32_1 = arith.constant 0 : i32
    return %c0_i32, %c0_i32_0 : i32, i32
  }
  func.func @transform_3(%arg0: i32) -> (i32, i32) {
    %c0_i32 = arith.constant 0 : i32
    %c0_i32_0 = arith.constant 0 : i32
    %c0_i32_1 = arith.constant 0 : i32
    return %c0_i32, %c0_i32_0 : i32, i32
  }
  func.func @transform_4(%arg0: i32) -> (i32, i32) {
    %c0_i32 = arith.constant 0 : i32
    %c0_i32_0 = arith.constant 0 : i32
    %c0_i32_1 = arith.constant 0 : i32
    return %c0_i32, %c0_i32_0 : i32, i32
  }
  func.func @transform_5(%arg0: i32) -> (i32, i32) {
    %c0_i32 = arith.constant 0 : i32
    %c0_i32_0 = arith.constant 0 : i32
    return %arg0, %c0_i32 : i32, i32
  }
  func.func @transform_6(%arg0: i32) -> (i32, i32, i32) {
    %c0_i32 = arith.constant 0 : i32
    %c0_i32_0 = arith.constant 0 : i32
    %c0_i32_1 = arith.constant 0 : i32
    return %arg0, %c0_i32, %c0_i32_0 : i32, i32, i32
  }
}

</mosaic_0001>

<bundles_post_ra>
// kernel: tpu_custom_call.1
= control target key start
LH: loop header
LB: loop body
LE: loop exit
PB: predicated region body
PF: predicated region fallthrough
CT: control target
= control target key end

     0   :  { %12 = vsyncpa [#allocation3], 0  ;;  %vm53_vm0 = vcmask 261120   ;;  %s520_s0 = inlined_call_operand.vmem [shape: f32[24,32], index: 0, kind: input, shape index: {}]   ;;  %s521_s1 = inlined_call_operand.vmem [shape: bf16[32,128], index: 1, kind: input, shape index: {}]   ;;  %s522_s2 = inlined_call_operand.vmem [shape: f32[1,128], index: 2, kind: input, shape index: {}]   ;;  %s523_s3 = inlined_call_operand.vmem [shape: bf16[128,32], index: 3, kind: input, shape index: {}]   ;;  %s524_s4 = inlined_call_operand.vmem [shape: f32[1,32], index: 4, kind: input, shape index: {}]   ;;  %s525_s5 = inlined_call_operand.hbm [shape: f32[24,32], index: 5, kind: output, shape index: {0}]   ;;  %s526_s6 = inlined_call_operand.hbm [shape: f32[1,8,128], index: 6, kind: output, shape index: {1}]  }
   0x1   :  { %v343_v0 = vld [vmem:[%s521_s1] sm:$0xff]   ;;  %v344_v1 = vld [vmem:[%s521_s1 + $0x8] sm:$0xff]   ;;  %v27_v4 = vld [vmem:[%s520_s0 + $0x10] sm:$0xff] }
   0x2   :  { %311 = vmatprep.subr.bf16.mxu0 %v343_v0  ;;  %v25_v2 = vld [vmem:[%s520_s0] sm:$0xff]  ;;  %v26_v3 = vld [vmem:[%s520_s0 + $0x8] sm:$0xff]  ;;  %v29_v8 = vpack.c.bf16 %v27_v4, %v27_v4 }
   0x3   :  { %312 = vmatpush3.bf16.msra.mxu0 %v343_v0  ;;  %v28_v5 = vpack.c.bf16 %v26_v3, %v25_v2  ;;  %v345_v6 = vld [vmem:[%s523_s3] sm:$0xff]   ;;  %v346_v7 = vld [vmem:[%s523_s3 + $0x8] sm:$0xff]  }
   0x4   :  { %313 = vmatprep.subr.bf16.mxu0 %v344_v1  ;;  %319 = vmatprep.subr.bf16.mxu1 %v345_v6 }
   0x5   :  { %315 = vmatprep.mubr.msk.bf16.mxu0 %vm53_vm0, %v28_v5  ;;  %320 = vmatpush3.bf16.msra.mxu1 %v345_v6 }
   0x6   :  { %321 = vmatprep.subr.bf16.mxu1 %v346_v7 }
   0x7   :  { %314 = vmatpush3.bf16.msra.mxu0 %v344_v1 }
   0x8   :  { %13 = vsyncpa [#allocation5], 0  ;;  %v347_v9 = vld [vmem:[%s523_s3 + $0x10] sm:$0xff]   ;;  %v348_v10 = vld [vmem:[%s523_s3 + $0x18] sm:$0xff]  }
   0x9   :  { %322 = vmatpush3.bf16.msra.mxu1 %v346_v7  ;;  %v349_v11 = vld [vmem:[%s523_s3 + $0x20] sm:$0xff]   ;;  %v350_v12 = vld [vmem:[%s523_s3 + $0x28] sm:$0xff]   ;;  %v351_v13 = vld [vmem:[%s523_s3 + $0x30] sm:$0xff]  }
   0xa   :  { %316 = vmatmul.mubr.msk.bf16.vlgmr.msra.gmra.mrb[0].mxu0 %vm53_vm0, %v29_v8  ;;  %323 = vmatprep.subr.bf16.mxu1 %v347_v9  ;;  %v352_v14 = vld [vmem:[%s523_s3 + $0x38] sm:$0xff]   ;;  %v283_v15 = vld [vmem:[%s522_s2] ss:$0 sm:$0xff]  ;;  %s407_s2 = smov [#allocation4]  }
   0xb   :  { %s271_s3 = sshll.u32 %s407_s2, 4  ;;  %s272_s3 = int_to_ptr.vmem [resolvable:$true] %s271_s3 }
   0xc   :  { %s359_s23 = scalar_lea.vmem %s272_s3, 128  ;;  %p364_p1 = scmp.lt.s32.totalorder %s272_s3, %s272_s3 }
   0xd   :  { %324 = vmatpush3.bf16.msra.mxu1 %v347_v9  ;;  %p360_p0 = scmp.ne.s32.totalorder %s272_s3, %s359_s23  ;;  %p365_p2 = scmp.lt.s32.totalorder %s359_s23, %s359_s23 }
   0xe   :  { %325 = vmatprep.subr.bf16.mxu1 %v348_v10 }
   0xf   :  { %p366_p3 = por %p365_p2, %p364_p1 }
  0x11   :  { %326 = vmatpush3.bf16.msra.mxu1 %v348_v10  ;;  %p367_p4 = pnand %p366_p3, %p360_p0 }
  0x12   :  { %327 = vmatprep.subr.bf16.mxu1 %v349_v11 }
  0x15   :  { %328 = vmatpush3.bf16.msra.mxu1 %v349_v11 }
  0x16   :  { %329 = vmatprep.subr.bf16.mxu1 %v350_v12 }
  0x19   :  { %330 = vmatpush3.bf16.msra.mxu1 %v350_v12 }
  0x1a   :  { %331 = vmatprep.subr.bf16.mxu1 %v351_v13 }
  0x1d   :  { %332 = vmatpush3.bf16.msra.mxu1 %v351_v13 }
  0x1e   :  { %333 = vmatprep.subr.bf16.mxu1 %v352_v14 }
  0x21   :  { %334 = vmatpush3.bf16.msra.mxu1 %v352_v14 }
  0xdd   :  { %v317_v16 = vpop.f32.mrb[0].mxu0 }
  0xde   :  { %v103_v17 = vadd.f32 %v317_v16, %v283_v15  ;;  %v94_v18 = vpop.f32.mrb[1].mxu0 }
  0xdf   :  { %v95_v19 = vadd.f32 %v283_v15, %v94_v18  ;;  %v318_v20 = vpop.f32.mrb[2].mxu0 }
  0xe0   :  { %v113_v21 = vmul.f32 0.70710677, %v103_v17  ;;  %v97_v22 = vpop.f32.mrb[3].mxu0  ;;  %v110_v32 = vmul.f32 0.5, %v103_v17 }
  0xe1   :  { %v111_v23 = vmul.f32 0.70710677, %v95_v19  ;;  %v98_v24 = vadd.f32 %v283_v15, %v97_v22  ;;  %v108_v29 = vmul.f32 0.5, %v95_v19 }
  0xe2   :  { %353 = verf.f32 %v113_v21 }
  0xe3   :  { %355 = verf.f32 %v111_v23  ;;  %v112_v25 = vmul.f32 0.70710677, %v98_v24  ;;  %v109_v33 = vmul.f32 0.5, %v98_v24 }
  0xe5   :  { %357 = verf.f32 %v112_v25 }
  0xec   :  { %v354_v26 = vpop.eup %353 }
  0xed   :  { %v356_v27 = vpop.eup %355  ;;  %v119_v28 = vadd.f32 1.0, %v354_v26 }
  0xee   :  { %v117_v30 = vadd.f32 1.0, %v356_v27 }
  0xef   :  { %v358_v31 = vpop.eup %357  ;;  %v122_v36 = vmul.f32 %v119_v28, %v110_v32 }
  0xf0   :  { %v118_v34 = vadd.f32 1.0, %v358_v31  ;;  %v120_v35 = vmul.f32 %v117_v30, %v108_v29 }
  0xf1   :  { %v130_v41 = vpack.c.bf16 %v122_v36, %v122_v36  ;;  %v126_v43 = vand.u32 2147483647, %v122_v36 }
  0xf2   :  { %v121_v37 = vmul.f32 %v118_v34, %v109_v33  ;;  %v123_v38 = vand.u32 2147483647, %v120_v35 }
  0xf4   :  { %v124_v39 = vand.u32 2147483647, %v121_v37  ;;  %v129_v40 = vpack.c.bf16 %v121_v37, %v120_v35 }
  0xf6   :  { %335 = vmatprep.mubr.bf16.mxu1 %v129_v40  ;;  %v125_v42 = vadd.f32 %v124_v39, %v123_v38 }
  0xf7   :  { %336 = vmatmul.mubr.bf16.vlgmr.msra.gmra.mrb[0].mxu1 %v130_v41 }
  0xf8   :  { %v127_v44 = vadd.f32 %v126_v43, %v125_v42 }
  0xfa   :  { %128 = vst [vmem:[#allocation4] sm:$0xff] %v127_v44 }
  0xfb   :  { %370 = shalt.err (!%p367_p4)
}
  0xfc   :  { %s371_s26 = scalar_lea.hbm %s526_s6, 128 }
  0xfd   :  { %p372_p5 = scmp.ne.s32.totalorder %s526_s6, %s371_s26  ;;  %p375_p6 = scmp.lt.u32.totalorder %s371_s26, %s526_s6 }
  0xff   :  { %p377_p7 = pnand %p375_p6, %p372_p5 }
 0x101   :  { %380 = shalt.err (!%p377_p7)
}
 0x102   :  { %274 = dma.vmem_to_hbm [thread:$0]  %s272_s3, 128, %s526_s6, [#allocation5]   ;;  %v288_v45 = vld [vmem:[%s524_s4] ss:$0 sm:$0xff] }
 0x103   :  { %s408_s0 = smov [#allocation2]  }
 0x104   :  { %s258_s10 = sshll.u32 %s408_s0, 4  ;;  %s259_s10 = int_to_ptr.vmem [resolvable:$true] %s258_s10 }
 0x105   :  { %s381_s6 = scalar_lea.vmem %s259_s10, 384  ;;  %p386_p9 = scmp.lt.s32.totalorder %s259_s10, %s259_s10 }
 0x106   :  { %p382_p8 = scmp.ne.s32.totalorder %s259_s10, %s381_s6  ;;  %p387_p10 = scmp.lt.s32.totalorder %s381_s6, %s381_s6 }
 0x108   :  { %p388_p11 = por %p387_p10, %p386_p9 }
 0x10a   :  { %p389_p12 = pnand %p388_p11, %p382_p8 }
 0x1ca   :  { %v337_v46 = vpop.f32.mrb[0].mxu1 }
 0x1cb   :  { %v245_v47 = vadd.f32 %v337_v46, %v288_v45  ;;  %v236_v48 = vpop.f32.mrb[1].mxu1 }
 0x1cc   :  { %v237_v49 = vadd.f32 %v288_v45, %v236_v48  ;;  %v338_v50 = vpop.f32.mrb[2].mxu1 }
 0x1cd   :  { %252 = vst.msk [vmem:[#allocation2 + $0x10] sm:$0xff] %vm53_vm0, %v245_v47  ;;  %v239_v51 = vpop.f32.mrb[3].mxu1 }
 0x1ce   :  { %250 = vst.msk [vmem:[#allocation2] sm:$0xff] %vm53_vm0, %v237_v49  ;;  %v240_v52 = vadd.f32 %v288_v45, %v239_v51 }
 0x1d0   :  { %251 = vst.msk [vmem:[#allocation2 + $0x8] sm:$0xff] %vm53_vm0, %v240_v52 }
 0x1d1   :  { %392 = shalt.err (!%p389_p12)
}
 0x1d2   :  { %s393_s12 = scalar_lea.hbm %s525_s5, 384 }
 0x1d3   :  { %p394_p13 = scmp.ne.s32.totalorder %s525_s5, %s393_s12  ;;  %p397_p0 = scmp.lt.u32.totalorder %s393_s12, %s525_s5 }
 0x1d5   :  { %p399_p1 = pnand %p397_p0, %p394_p13 }
 0x1d7   :  { %402 = shalt.err (!%p399_p1)
}
 0x1d8   :  { %s409_s17 = smov 128   ;;  %s410_s18 = smov 8  }
 0x1d9   :  { %264 = dma.vmem_to_hbm [thread:$0]  %s259_s10, 384, %s525_s5, [#allocation3], %s409_s17, %s409_s17, %s410_s18  }
 0x1da   :  { %403 = dma.done.wait [#allocation3], 384  }
 0x1db   :  { %404 = vsyncadd [#allocation3], 4294966912 }
 0x1dc   :  { %405 = dma.done.wait [#allocation5], 128  }
 0x1dd   :  { %406 = vsyncadd [#allocation5], 4294967168 }
 0x1de   :  { %281 = vsyncpa [#allocation3], 1 }
 0x1df   :  { %282 = vsyncpa [#allocation5], 1 }

</bundles_post_ra>
